<compile_context>
chip_gen: v7x
topology: tpu7x:2x2x1
jax: 0.10.0
libtpu: 0.0.40
codegen_flags: <defaults>
</compile_context>

<pallas_src>
import jax
import jax.numpy as jnp
from jax.experimental import pallas as pl
from jax.experimental.pallas import tpu as pltpu


def dirichlet_scaling_kernel(logits_ref, wT_ref, b_ref, out_ref):
    """log_softmax over last axis + Linear, fused in VMEM.

    logits_ref: [TN, K] (any float dtype; upcast to f32 inside)
    wT_ref:     [K, K]  (already transposed -> kernel does logp @ wT)
    b_ref:      [1, K]
    out_ref:    [TN, K] (caller's dtype)
    """
    x = logits_ref[...].astype(jnp.float32)
    # numerically-stable log_softmax along the class (lane) axis
    m = jnp.max(x, axis=-1, keepdims=True)
    z = x - m
    lse = jnp.log(jnp.sum(jnp.exp(z), axis=-1, keepdims=True))
    logp = z - lse
    # fc: y = logp @ W^T + b   (MXU matmul, f32 accumulate)
    y = jnp.dot(logp, wT_ref[...].astype(jnp.float32),
                preferred_element_type=jnp.float32)
    out_ref[...] = (y + b_ref[...].astype(jnp.float32)).astype(out_ref.dtype)


def dirichlet_scaling_forward(logits, W, b, *, row_tile=2048):
    """Pallas wrapper.

    logits: [N, K] in the backbone's native dtype (f32 or bf16).
    W:      [K, K] PyTorch Linear weight (out_features, in_features).
    b:      [K]    PyTorch Linear bias.
    row_tile: rows per grid step (multiple of 8); sized well inside the smallest
              scoped-VMEM budget across v5e/v6e/v7x.
    """
    N, K = logits.shape
    wT = W.T                       # pre-transpose so the kernel does logp @ wT
    b2 = b.reshape(1, K)

    # Tile the batch axis. A single block equal to the full dims is always legal;
    # when tiling, TN (=row_tile) is a multiple of 8 so the (8,128) sublane rule
    # holds, and cdiv handles a ragged final block (rows are independent, so
    # padded rows never contaminate valid output rows).
    TN = N if N <= row_tile else row_tile
    grid = (pl.cdiv(N, TN),)

    in_bytes = jnp.dtype(logits.dtype).itemsize
    w_bytes = jnp.dtype(W.dtype).itemsize
    cost = pl.CostEstimate(
        flops=2 * N * K * K,                 # the fc matmul
        transcendentals=2 * N * K,           # exp + log in log_softmax
        bytes_accessed=2 * N * K * in_bytes + (K * K + K) * w_bytes,
    )

    return pl.pallas_call(
        dirichlet_scaling_kernel,
        out_shape=jax.ShapeDtypeStruct((N, K), logits.dtype),
        grid_spec=pltpu.PrefetchScalarGridSpec(
            num_scalar_prefetch=0,
            grid=grid,
            in_specs=[
                pl.BlockSpec((TN, K), lambda i: (i, 0)),   # tiled rows, pipelined
                pl.BlockSpec((K, K), lambda i: (0, 0)),    # VMEM-resident weight
                pl.BlockSpec((1, K), lambda i: (0, 0)),    # VMEM-resident bias
            ],
            out_specs=pl.BlockSpec((TN, K), lambda i: (i, 0)),
        ),
        compiler_params=pltpu.CompilerParams(
            dimension_semantics=("parallel",)),            # rows independent -> megacore-shardable
        cost_estimate=cost,
    )(logits, wT, b2)


def base_model(x, w_base, b_base):
    """Frozen synthetic backbone (glue, plain JAX): flatten NCHW -> linear."""
    # TODO(synk): the real base_model is an arbitrary frozen torch backbone; it is
    # represented here by a deterministic flatten+linear stand-in (glue, not Pallas).
    N = x.shape[0]
    feat = x.reshape(N, -1)
    return feat @ w_base + b_base


def reference_forward(logits, W, b):
    """Pure-JAX reference for the kernel (log_softmax + Linear)."""
    logp = jax.nn.log_softmax(logits.astype(jnp.float32), axis=1)
    return logp @ W.T.astype(jnp.float32) + b.astype(jnp.float32)


if __name__ == "__main__":
    key = jax.random.PRNGKey(0)
    k_x, k_wb, k_bb, k_w, k_b = jax.random.split(key, 5)

    # small shapes consistent with the module: NCHW image, num_classes classes
    N, C, H, Wd = 2, 4, 16, 16
    num_classes = 10

    x = jax.random.normal(k_x, (N, C, H, Wd), dtype=jnp.float32)

    # frozen base_model params (deterministic init)
    feat_dim = C * H * Wd
    w_base = jax.random.normal(k_wb, (feat_dim, num_classes), dtype=jnp.float32) * 0.05
    b_base = jax.random.normal(k_bb, (num_classes,), dtype=jnp.float32) * 0.05

    # DirichletScaling fc params: nn.Linear(num_classes, num_classes)
    # (deterministic uniform init, matching PyTorch's U(-1/sqrt(k), 1/sqrt(k)) range)
    bound = 1.0 / jnp.sqrt(num_classes)
    W_fc = jax.random.uniform(k_w, (num_classes, num_classes),
                              minval=-bound, maxval=bound, dtype=jnp.float32)
    b_fc = jax.random.uniform(k_b, (num_classes,),
                              minval=-bound, maxval=bound, dtype=jnp.float32)

    # base_model (glue) -> logits [N, num_classes]
    logits = base_model(x, w_base, b_base)

    # hot path in Pallas: log_softmax + fc (no wrapper-side dtype cast)
    out = dirichlet_scaling_forward(logits, W_fc, b_fc)
    out = jax.block_until_ready(out)

    ref = reference_forward(logits, W_fc, b_fc)
    assert out.shape == (N, num_classes)
    assert jnp.allclose(out.astype(jnp.float32), ref, atol=1e-5, rtol=1e-5), \
        "mismatch vs reference"

    print("KERNEL_OK")
</pallas_src>

<mosaic_0001>
module attributes {stable_mosaic.version = 11 : i64} {
  func.func @dirichlet_scaling_kernel(%arg0: i32, %arg1: memref<2x10xf32, #tpu.memory_space<vmem>>, %arg2: memref<10x10xf32, #tpu.memory_space<vmem>>, %arg3: memref<1x10xf32, #tpu.memory_space<vmem>>, %arg4: memref<2x10xf32, #tpu.memory_space<vmem>>) attributes {dimension_semantics = [#tpu.dimension_semantics<parallel>], iteration_bounds = array<i64: 1>, scalar_prefetch = 0 : i64, scratch_operands = 0 : i64, tpu.core_type = #tpu.core_type<tc>, window_params = [{transform_indices = @transform_0, window_bounds = array<i64: 2, 10>}, {pipeline_mode = #tpu.pipeline_mode<synchronous>, transform_indices = @transform_1, window_bounds = array<i64: 10, 10>}, {pipeline_mode = #tpu.pipeline_mode<synchronous>, transform_indices = @transform_2, window_bounds = array<i64: 1, 10>}, {transform_indices = @transform_3, window_bounds = array<i64: 2, 10>}]} {
    %c0 = arith.constant 0 : index
    %c0_0 = arith.constant 0 : index
    %0 = vector.load %arg1[%c0, %c0_0] : memref<2x10xf32, #tpu.memory_space<vmem>>, vector<2x10xf32>
    %cst = arith.constant dense<0xFF800000> : vector<2xf32>
    %1 = vector.multi_reduction <maximumf>, %0, %cst [1] : vector<2x10xf32> to vector<2xf32>
    %2 = vector.shape_cast %1 : vector<2xf32> to vector<2x1xf32>
    %3 = vector.broadcast %2 : vector<2x1xf32> to vector<2x10xf32>
    %4 = arith.subf %0, %3 : vector<2x10xf32>
    %5 = math.exp %4 : vector<2x10xf32>
    %cst_1 = arith.constant dense<0.000000e+00> : vector<2xf32>
    %6 = vector.multi_reduction <add>, %5, %cst_1 [1] : vector<2x10xf32> to vector<2xf32>
    %7 = vector.shape_cast %6 : vector<2xf32> to vector<2x1xf32>
    %8 = math.log %7 : vector<2x1xf32>
    %9 = vector.broadcast %8 : vector<2x1xf32> to vector<2x10xf32>
    %10 = arith.subf %4, %9 : vector<2x10xf32>
    %c0_2 = arith.constant 0 : index
    %c0_3 = arith.constant 0 : index
    %11 = vector.load %arg2[%c0_2, %c0_3] : memref<10x10xf32, #tpu.memory_space<vmem>>, vector<10x10xf32>
    %cst_4 = arith.constant dense<0.000000e+00> : vector<2x10xf32>
    %12 = tpu.matmul %10, %11, %cst_4 {dimension_numbers = #tpu.dot_dimension_numbers<[1], [0], [0], [1], [0, 0, 1, 1], [], []>} : vector<2x10xf32>, vector<10x10xf32>, vector<2x10xf32> -> vector<2x10xf32>
    %c0_5 = arith.constant 0 : index
    %c0_6 = arith.constant 0 : index
    %13 = vector.load %arg3[%c0_5, %c0_6] : memref<1x10xf32, #tpu.memory_space<vmem>>, vector<1x10xf32>
    %14 = vector.broadcast %13 : vector<1x10xf32> to vector<2x10xf32>
    %15 = arith.addf %12, %14 : vector<2x10xf32>
    %c0_7 = arith.constant 0 : index
    %c0_8 = arith.constant 0 : index
    %16 = vector.load %arg4[%c0_7, %c0_8] : memref<2x10xf32, #tpu.memory_space<vmem>>, vector<2x10xf32>
    tpu.vector_store %arg4[%c0_7, %c0_8], %15 {strides = array<i32>} : memref<2x10xf32, #tpu.memory_space<vmem>>, vector<2x10xf32>,
    return
  }
  func.func @transform_0(%arg0: i32) -> (i32, i32) {
    %c0_i32 = arith.constant 0 : i32
    %c0_i32_0 = arith.constant 0 : i32
    return %arg0, %c0_i32 : i32, i32
  }
  func.func @transform_1(%arg0: i32) -> (i32, i32) {
    %c0_i32 = arith.constant 0 : i32
    %c0_i32_0 = arith.constant 0 : i32
    %c0_i32_1 = arith.constant 0 : i32
    return %c0_i32, %c0_i32_0 : i32, i32
  }
  func.func @transform_2(%arg0: i32) -> (i32, i32) {
    %c0_i32 = arith.constant 0 : i32
    %c0_i32_0 = arith.constant 0 : i32
    %c0_i32_1 = arith.constant 0 : i32
    return %c0_i32, %c0_i32_0 : i32, i32
  }
  func.func @transform_3(%arg0: i32) -> (i32, i32) {
    %c0_i32 = arith.constant 0 : i32
    %c0_i32_0 = arith.constant 0 : i32
    return %arg0, %c0_i32 : i32, i32
  }
}

</mosaic_0001>

<bundles_post_ra>
// kernel: tpu_custom_call.1
= control target key start
LH: loop header
LB: loop body
LE: loop exit
PB: predicated region body
PF: predicated region fallthrough
CT: control target
= control target key end

     0   :  { %8 = vsyncpa [#allocation3], 0  ;;  %s339_s0 = inlined_call_operand.hbm [shape: f32[2,10], index: 0, kind: input, shape index: {}]   ;;  %s340_s1 = inlined_call_operand.hbm [shape: f32[10,10], index: 1, kind: input, shape index: {}]   ;;  %s341_s2 = inlined_call_operand.vmem [shape: f32[1,10], index: 2, kind: input, shape index: {}]   ;;  %s342_s3 = inlined_call_operand.hbm [shape: f32[2,10], index: 3, kind: output, shape index: {}]  }
   0x1   :  { %9 = vsyncpa [#allocation6], 0 }
   0x2   :  { %10 = vsyncpa [#allocation4], 0  ;;  %s261_s12 = smov [#allocation2]   ;;  %s262_s14 = smov [#allocation5]  }
   0x3   :  { %s17_s13 = sshll.u32 %s261_s12, 4  ;;  %s26_s15 = sshll.u32 %s262_s14, 4  ;;  %s18_s13 = int_to_ptr.vmem [resolvable:$true] %s17_s13  ;;  %s290_s15 = int_to_ptr.vmem [resolvable:$true] %s26_s15 }
   0x4   :  { %s189_s18 = scalar_lea.hbm %s339_s0, 32 }
   0x5   :  { %p190_p0 = scmp.ne.s32.totalorder %s339_s0, %s189_s18  ;;  %p193_p1 = scmp.lt.u32.totalorder %s189_s18, %s339_s0 }
   0x7   :  { %p195_p2 = pnand %p193_p1, %p190_p0 }
   0x9   :  { %198 = shalt.err (!%p195_p2)
}
   0xa   :  { %s199_s23 = scalar_lea.vmem %s18_s13, 32  ;;  %p204_p4 = scmp.lt.s32.totalorder %s18_s13, %s18_s13 }
   0xb   :  { %p200_p3 = scmp.ne.s32.totalorder %s18_s13, %s199_s23  ;;  %p205_p5 = scmp.lt.s32.totalorder %s199_s23, %s199_s23 }
   0xd   :  { %p206_p6 = por %p205_p5, %p204_p4 }
   0xf   :  { %p207_p7 = pnand %p206_p6, %p200_p3 }
  0x11   :  { %210 = shalt.err (!%p207_p7)
}
  0x12   :  { %20 = dma.hbm_to_vmem [thread:$0]  %s339_s0, 32, %s18_s13, [#allocation3]  }
  0x13   :  { %s211_s28 = scalar_lea.hbm %s340_s1, 256 }
  0x14   :  { %p212_p8 = scmp.ne.s32.totalorder %s340_s1, %s211_s28  ;;  %p215_p9 = scmp.lt.u32.totalorder %s211_s28, %s340_s1 }
  0x16   :  { %p217_p10 = pnand %p215_p9, %p212_p8 }
  0x18   :  { %220 = shalt.err (!%p217_p10)
}
  0x19   :  { %s221_s6 = scalar_lea.vmem %s290_s15, 256  ;;  %p226_p12 = scmp.lt.s32.totalorder %s290_s15, %s290_s15 }
  0x1a   :  { %p222_p11 = scmp.ne.s32.totalorder %s290_s15, %s221_s6  ;;  %p227_p13 = scmp.lt.s32.totalorder %s221_s6, %s221_s6 }
  0x1c   :  { %p228_p0 = por %p227_p13, %p226_p12 }
  0x1e   :  { %p229_p1 = pnand %p228_p0, %p222_p11 }
  0x20   :  { %232 = shalt.err (!%p229_p1)
}
  0x21   :  { %s263_s0 = smov 128   ;;  %s264_s7 = smov 8  }
  0x22   :  { %32 = dma.hbm_to_vmem [thread:$0]  %s340_s1, 256, %s290_s15, [#allocation6], %s263_s0, %s263_s0, %s264_s7  }
  0x23   :  { %255 = dma.done.wait [#allocation3], 32  }
  0x24   :  { %256 = vsyncadd [#allocation3], 4294967264 }
  0x25   :  { %257 = dma.done.wait [#allocation6], 256  }
  0x26   :  { %258 = vsyncadd [#allocation6], 4294967040  ;;  %vm42_vm0 = vcmask 74752   ;;  %v41_v0 = vld [vmem:[#allocation2] sm:$0x3]  ;;  %v55_v7 = vld [vmem:[#allocation5] sm:$0xff] }
  0x27   :  { %v43_v1 = vsel %vm42_vm0, %v41_v0, -inf  ;;  %v56_v8 = vld [vmem:[#allocation5 + $0x8] sm:$0x3]  ;;  %vm68_vm1 = vcmask 1041408   ;;  %v265_v10 = vmov 0.0|0.0   ;;  %vm266_vm2 = vmmov 1  }
  0x28   :  { %44 = vmax.xlane.f32.xlu0 %v43_v1  ;;  %v173_v9 = vpack.c.bf16 %v56_v8, %v55_v7  ;;  %172 = vmatprep.subr.bf16.mxu0 %v265_v10  ;;  %vm174_vm3 = vmpackc.low %vm68_vm1, %vm266_vm2  ;;  %vm267_vm4 = vmmov 0   ;;  %v268_v11 = vmov 0.0   ;;  %vm64_vm5 = vcmask 80896   ;;  %v159_v16 = vld [vmem:[%s341_s2] ss:$0 sm:$0xff]  ;;  %s269_s11 = smov [#allocation7]  }
  0x29   :  { %169 = vmatprep.mubr.msk.f32.mxu0 %vm267_vm4, %v268_v11  ;;  %s149_s12 = sshll.u32 %s269_s11, 4  ;;  %s150_s12 = int_to_ptr.vmem [resolvable:$true] %s149_s12 }
  0x2a   :  { %175 = vmatpush3.bf16.msk.msra.mxu0 %vm174_vm3, %v173_v9  ;;  %s233_s13 = scalar_lea.vmem %s150_s12, 32  ;;  %p238_p3 = scmp.lt.s32.totalorder %s150_s12, %s150_s12 }
  0x2b   :  { %p234_p2 = scmp.ne.s32.totalorder %s150_s12, %s233_s13  ;;  %p239_p4 = scmp.lt.s32.totalorder %s233_s13, %s233_s13 }
  0x2d   :  { %p240_p5 = por %p239_p4, %p238_p3 }
  0x2f   :  { %p241_p6 = pnand %p240_p5, %p234_p2 }
  0xb5   :  { %v45_v2 = vpop.xlane.xlu0 %44 }
  0xb6   :  { %v46_v3 = vsub.f32 %v41_v0, %v45_v2 }
  0xb8   :  { %v47_v4 = vmul.f32 1.442695, %v46_v3 }
  0xba   :  { %185 = vpow2.f32 %v47_v4 }
  0xc4   :  { %v186_v5 = vpop.eup %185 }
  0xc5   :  { %v49_v6 = vsel %vm42_vm0, %v186_v5, 0.0 }
  0xc6   :  { %50 = vadd.xlane.f32.xlu0 %v49_v6 }
 0x153   :  { %v51_v12 = vpop.xlane.xlu0 %50 }
 0x154   :  { %187 = vlog2.f32 %v51_v12 }
 0x15e   :  { %v188_v13 = vpop.eup %187 }
 0x15f   :  { %v53_v14 = vmul.f32 0.6931472, %v188_v13 }
 0x161   :  { %v54_v15 = vsub.f32 %v46_v3, %v53_v14 }
 0x163   :  { %170 = vmatmul.mubr.msk.f32.vlgmr.msra.gmra.mrb[0].mxu0 %vm64_vm5, %v54_v15 }
 0x236   :  { %v138_v17 = vpop.f32.mrb[0].mxu0 }
 0x237   :  { %v139_v18 = vadd.f32 %v159_v16, %v138_v17  ;;  %v171_v19 = vpop.f32.mrb[1].mxu0 }
 0x239   :  { %142 = vst.msk [vmem:[#allocation7] sm:$0x3] %vm42_vm0, %v139_v18 }
 0x23a   :  { %244 = shalt.err (!%p241_p6)
}
 0x23b   :  { %s245_s16 = scalar_lea.hbm %s342_s3, 32 }
 0x23c   :  { %p246_p7 = scmp.ne.s32.totalorder %s342_s3, %s245_s16  ;;  %p249_p8 = scmp.lt.u32.totalorder %s245_s16, %s342_s3 }
 0x23e   :  { %p251_p9 = pnand %p249_p8, %p246_p7 }
 0x240   :  { %254 = shalt.err (!%p251_p9)
}
 0x241   :  { %152 = dma.vmem_to_hbm [thread:$0]  %s150_s12, 32, %s342_s3, [#allocation4]  }
 0x242   :  { %259 = dma.done.wait [#allocation4], 32  }
 0x243   :  { %260 = vsyncadd [#allocation4], 4294967264 }
 0x244   :  { %156 = vsyncpa [#allocation3], 1 }
 0x245   :  { %157 = vsyncpa [#allocation6], 1 }
 0x246   :  { %158 = vsyncpa [#allocation4], 1 }

</bundles_post_ra>
